<compile_context>
chip_gen: v6e
topology: v6e:2x2x1
jax: 0.10.0
libtpu: 0.0.40
codegen_flags: <defaults>
</compile_context>

<pallas_src>
import functools

import jax
import jax.numpy as jnp
from jax.experimental import pallas as pl
from jax.experimental.pallas import tpu as pltpu


def _round_up(x, m):
    return ((x + m - 1) // m) * m


def _default_vmem_limit_bytes():
    """Generation-aware scoped-VMEM limit: ~75% of physical per-core VMEM."""
    try:
        cap = getattr(pltpu.get_tpu_info(), "vmem_capacity_bytes", None)
        if cap:
            return int(cap) * 3 // 4      # ~96 MiB v5e/v6e, ~48 MiB v7x
    except Exception:
        pass
    return 48 * 1024 * 1024


def gcn_layer_kernel(a_ref, feat_ref, w_ref, b_ref, o_ref, *, apply_relu):
    """One GCN layer for a tile of destination rows.

    a_ref:    (tm, N_p)     bf16  rows of the normalized adjacency (dst, src)
    feat_ref: (N_p, C_in)   bf16  source-node features (all nodes)
    w_ref:    (C_in, C_out) bf16  layer weight
    b_ref:    (1, C_out)    f32   layer bias
    o_ref:    (tm, C_out)         output rows (bf16 for layer 1, f32 for layer 2)

    Aggregate-then-transform:  out = (A_tile @ feat) @ W + b  [+ ReLU]
    (optimal association when C_in <= C_out, which holds for the padded dims
    used here; both MXU matmuls accumulate in f32).
    """
    agg = jnp.dot(a_ref[...], feat_ref[...],
                  preferred_element_type=jnp.float32)
    out = jnp.dot(agg.astype(jnp.bfloat16), w_ref[...],
                  preferred_element_type=jnp.float32)
    out = out + b_ref[...]                      # f32 bias add on the VPU
    if apply_relu:
        out = jnp.maximum(out, 0.0)
    o_ref[...] = out.astype(o_ref.dtype)


def _gcn_layer(a_bf, feat_bf, w_bf, b_f32, *, apply_relu, out_dtype, tm,
               vmem_limit):
    n_p = a_bf.shape[0]
    c_in = w_bf.shape[0]
    c_out = w_bf.shape[1]
    grid = (n_p // tm,)

    flops = 2 * n_p * n_p * c_in + 2 * n_p * c_in * c_out
    bytes_accessed = (2 * n_p * n_p                 # A (bf16)
                      + 2 * n_p * c_in              # feat (bf16)
                      + 2 * c_in * c_out            # W (bf16)
                      + 4 * c_out                   # bias (f32)
                      + jnp.dtype(out_dtype).itemsize * n_p * c_out)

    return pl.pallas_call(
        functools.partial(gcn_layer_kernel, apply_relu=apply_relu),
        out_shape=jax.ShapeDtypeStruct((n_p, c_out), out_dtype),
        grid_spec=pltpu.PrefetchScalarGridSpec(
            num_scalar_prefetch=0,
            grid=grid,
            in_specs=[
                pl.BlockSpec((tm, n_p), lambda i: (i, 0)),      # A row tile
                pl.BlockSpec((n_p, c_in), lambda i: (0, 0)),    # features
                pl.BlockSpec((c_in, c_out), lambda i: (0, 0)),  # weight
                pl.BlockSpec((1, c_out), lambda i: (0, 0)),     # bias
            ],
            out_specs=pl.BlockSpec((tm, c_out), lambda i: (i, 0)),
        ),
        compiler_params=pltpu.CompilerParams(
            dimension_semantics=("parallel",),
            vmem_limit_bytes=vmem_limit),
        cost_estimate=pl.CostEstimate(
            flops=flops, transcendentals=0, bytes_accessed=bytes_accessed),
    )(a_bf, feat_bf, w_bf, b_f32)


@jax.jit
def gcn_relation_predictor_forward(x, edge_index, params):
    """Fused forward pass (adjacency build + both GCN layers), fully jitted."""
    n, f = x.shape
    w1, b1, w2, b2 = params["w1"], params["b1"], params["w2"], params["b2"]
    h = w1.shape[1]
    o = w2.shape[1]

    # Lane-dense padded sizes (node dim also padded to 128 so A is dense on
    # both lane axes and the row-tile grid aligns cleanly).
    n_p = max(_round_up(n, 128), 128)
    f_p = _round_up(f, 128)
    h_p = _round_up(h, 128)
    o_p = _round_up(o, 128)

    # ---- Build the padded bf16 A_hat directly (single N_p^2 materialization).
    src = edge_index[0]
    dst = edge_index[1]
    loops = jnp.arange(n, dtype=edge_index.dtype)
    src = jnp.concatenate([src, loops])
    dst = jnp.concatenate([dst, loops])
    deg = jnp.zeros((n,), jnp.float32).at[dst].add(1.0)
    dinv = jnp.where(deg > 0, jax.lax.rsqrt(deg), 0.0)
    norm = dinv[src] * dinv[dst]
    # A_hat[dst, src] = norm  (A_hat @ X aggregates sources into targets);
    # rows/cols >= n stay exactly zero (load-bearing: see padding invariant).
    a_bf = (jnp.zeros((n_p, n_p), jnp.float32)
            .at[dst, src].add(norm)).astype(jnp.bfloat16)

    # ---- Zero-padded, bf16 MXU operands (f32 biases for the VPU epilogue).
    x_bf = (jnp.zeros((n_p, f_p), jnp.float32)
            .at[:n, :f].set(x)).astype(jnp.bfloat16)
    w1_bf = (jnp.zeros((f_p, h_p), jnp.float32)
             .at[:f, :h].set(w1)).astype(jnp.bfloat16)
    b1_p = jnp.zeros((1, h_p), jnp.float32).at[0, :h].set(b1)
    w2_bf = (jnp.zeros((h_p, o_p), jnp.float32)
             .at[:h, :o].set(w2)).astype(jnp.bfloat16)
    b2_p = jnp.zeros((1, o_p), jnp.float32).at[0, :o].set(b2)

    tm = 256 if n_p % 256 == 0 else 128
    vmem_limit = _default_vmem_limit_bytes()

    # Layer 1: h1 = relu(A @ X @ W1 + b1), kept in bf16 for the layer-2 MXU.
    h1_bf = _gcn_layer(a_bf, x_bf, w1_bf, b1_p, apply_relu=True,
                       out_dtype=jnp.bfloat16, tm=tm, vmem_limit=vmem_limit)
    # Layer 2: out = A @ h1 @ W2 + b2 (f32 output).
    out_p = _gcn_layer(a_bf, h1_bf, w2_bf, b2_p, apply_relu=False,
                       out_dtype=jnp.float32, tm=tm, vmem_limit=vmem_limit)

    # Slice off lane/sublane padding.
    return out_p[:n, :o]


def build_normalized_adjacency(edge_index, num_nodes):
    """Dense f32 A_hat = D^{-1/2}(A+I)D^{-1/2} (for the pure-JAX reference)."""
    src = edge_index[0]
    dst = edge_index[1]
    loops = jnp.arange(num_nodes, dtype=edge_index.dtype)
    src = jnp.concatenate([src, loops])
    dst = jnp.concatenate([dst, loops])
    deg = jnp.zeros((num_nodes,), jnp.float32).at[dst].add(1.0)
    dinv = jnp.where(deg > 0, jax.lax.rsqrt(deg), 0.0)
    norm = dinv[src] * dinv[dst]
    return jnp.zeros((num_nodes, num_nodes), jnp.float32).at[dst, src].add(norm)


def gcn_reference_forward(x, edge_index, params):
    """Plain-JAX f32 reference (PyG GCNConv semantics)."""
    a_hat = build_normalized_adjacency(edge_index, x.shape[0])
    h1 = jnp.maximum(a_hat @ (x @ params["w1"]) + params["b1"], 0.0)
    return a_hat @ (h1 @ params["w2"]) + params["b2"]


def init_params(key, input_dim, hidden_dim, output_dim):
    k1, k2, k3, k4 = jax.random.split(key, 4)
    w1 = jax.random.normal(k1, (input_dim, hidden_dim), jnp.float32) * (
        1.0 / jnp.sqrt(jnp.float32(input_dim)))
    b1 = jnp.zeros((hidden_dim,), jnp.float32)
    w2 = jax.random.normal(k2, (hidden_dim, output_dim), jnp.float32) * (
        1.0 / jnp.sqrt(jnp.float32(hidden_dim)))
    b2 = jnp.zeros((output_dim,), jnp.float32)
    # self.fc = nn.Linear(output_dim, output_dim) is used only in .score(),
    # not in forward(); initialized here for completeness.
    fc_w = jax.random.normal(k3, (output_dim, output_dim), jnp.float32) * (
        1.0 / jnp.sqrt(jnp.float32(output_dim)))
    fc_b = jax.random.normal(k4, (output_dim,), jnp.float32) * 0.01
    return {"w1": w1, "b1": b1, "w2": w2, "b2": b2, "fc_w": fc_w, "fc_b": fc_b}


if __name__ == "__main__":
    key = jax.random.PRNGKey(0)
    k_x, k_p = jax.random.split(key, 2)

    num_nodes = 8
    input_dim = 16
    hidden_dim = 128   # matches the spec's hidden_dim = 128
    output_dim = 8

    # node features (N, F)
    x = jax.random.normal(k_x, (num_nodes, input_dim), jnp.float32)

    # deterministic small edge list (2, E): bidirectional ring + two extras
    src = jnp.arange(num_nodes, dtype=jnp.int32)
    dst = (src + 1) % num_nodes
    edge_index = jnp.stack(
        [jnp.concatenate([src, dst, jnp.array([0, 3], jnp.int32)]),
         jnp.concatenate([dst, src, jnp.array([4, 7], jnp.int32)])],
        axis=0,
    )

    params = init_params(k_p, input_dim, hidden_dim, output_dim)

    out = gcn_relation_predictor_forward(x, edge_index, params)
    out = jax.block_until_ready(out)

    assert out.shape == (num_nodes, output_dim)
    assert bool(jnp.all(jnp.isfinite(out)))

    # Numerics check against the f32 reference (bf16 MXU operands, f32 accum).
    ref = gcn_reference_forward(x, edge_index, params)
    assert jnp.allclose(out, ref, rtol=5e-2, atol=1e-1), (
        f"max abs err {jnp.max(jnp.abs(out - ref))}")

    print("KERNEL_OK")
</pallas_src>

<mosaic_0001>
module attributes {stable_mosaic.version = 11 : i64} {
  func.func @gcn_layer_kernel(%arg0: i32, %arg1: memref<128x128xbf16, #tpu.memory_space<vmem>>, %arg2: memref<128x128xbf16, #tpu.memory_space<vmem>>, %arg3: memref<128x128xbf16, #tpu.memory_space<vmem>>, %arg4: memref<1x128xf32, #tpu.memory_space<vmem>>, %arg5: memref<128x128xbf16, #tpu.memory_space<vmem>>) attributes {dimension_semantics = [#tpu.dimension_semantics<parallel>], iteration_bounds = array<i64: 1>, scalar_prefetch = 0 : i64, scratch_operands = 0 : i64, tpu.core_type = #tpu.core_type<tc>, window_params = [{transform_indices = @transform_0, window_bounds = array<i64: 128, 128>}, {pipeline_mode = #tpu.pipeline_mode<synchronous>, transform_indices = @transform_1, window_bounds = array<i64: 128, 128>}, {pipeline_mode = #tpu.pipeline_mode<synchronous>, transform_indices = @transform_2, window_bounds = array<i64: 128, 128>}, {pipeline_mode = #tpu.pipeline_mode<synchronous>, transform_indices = @transform_3, window_bounds = array<i64: 1, 128>}, {transform_indices = @transform_4, window_bounds = array<i64: 128, 128>}]} {
    %c0 = arith.constant 0 : index
    %c0_0 = arith.constant 0 : index
    %0 = vector.load %arg1[%c0, %c0_0] : memref<128x128xbf16, #tpu.memory_space<vmem>>, vector<128x128xbf16>
    %c0_1 = arith.constant 0 : index
    %c0_2 = arith.constant 0 : index
    %1 = vector.load %arg2[%c0_1, %c0_2] : memref<128x128xbf16, #tpu.memory_space<vmem>>, vector<128x128xbf16>
    %cst = arith.constant dense<0.000000e+00> : vector<128x128xf32>
    %2 = tpu.matmul %0, %1, %cst {dimension_numbers = #tpu.dot_dimension_numbers<[1], [0], [0], [1], [0, 0, 1, 1], [], []>} : vector<128x128xbf16>, vector<128x128xbf16>, vector<128x128xf32> -> vector<128x128xf32>
    %3 = arith.truncf %2 : vector<128x128xf32> to vector<128x128xbf16>
    %c0_3 = arith.constant 0 : index
    %c0_4 = arith.constant 0 : index
    %4 = vector.load %arg3[%c0_3, %c0_4] : memref<128x128xbf16, #tpu.memory_space<vmem>>, vector<128x128xbf16>
    %cst_5 = arith.constant dense<0.000000e+00> : vector<128x128xf32>
    %5 = tpu.matmul %3, %4, %cst_5 {dimension_numbers = #tpu.dot_dimension_numbers<[1], [0], [0], [1], [0, 0, 1, 1], [], []>} : vector<128x128xbf16>, vector<128x128xbf16>, vector<128x128xf32> -> vector<128x128xf32>
    %c0_6 = arith.constant 0 : index
    %c0_7 = arith.constant 0 : index
    %6 = vector.load %arg4[%c0_6, %c0_7] : memref<1x128xf32, #tpu.memory_space<vmem>>, vector<1x128xf32>
    %7 = vector.broadcast %6 : vector<1x128xf32> to vector<128x128xf32>
    %8 = arith.addf %5, %7 : vector<128x128xf32>
    %cst_8 = arith.constant 0.000000e+00 : f32
    %9 = vector.broadcast %cst_8 : f32 to vector<128x128xf32>
    %10 = arith.maximumf %8, %9 : vector<128x128xf32>
    %11 = arith.truncf %10 : vector<128x128xf32> to vector<128x128xbf16>
    %c0_9 = arith.constant 0 : index
    %c0_10 = arith.constant 0 : index
    %12 = vector.load %arg5[%c0_9, %c0_10] : memref<128x128xbf16, #tpu.memory_space<vmem>>, vector<128x128xbf16>
    tpu.vector_store %arg5[%c0_9, %c0_10], %11 {strides = array<i32>} : memref<128x128xbf16, #tpu.memory_space<vmem>>, vector<128x128xbf16>,
    return
  }
  func.func @transform_0(%arg0: i32) -> (i32, i32) {
    %c0_i32 = arith.constant 0 : i32
    %c0_i32_0 = arith.constant 0 : i32
    return %arg0, %c0_i32 : i32, i32
  }
  func.func @transform_1(%arg0: i32) -> (i32, i32) {
    %c0_i32 = arith.constant 0 : i32
    %c0_i32_0 = arith.constant 0 : i32
    %c0_i32_1 = arith.constant 0 : i32
    return %c0_i32, %c0_i32_0 : i32, i32
  }
  func.func @transform_2(%arg0: i32) -> (i32, i32) {
    %c0_i32 = arith.constant 0 : i32
    %c0_i32_0 = arith.constant 0 : i32
    %c0_i32_1 = arith.constant 0 : i32
    return %c0_i32, %c0_i32_0 : i32, i32
  }
  func.func @transform_3(%arg0: i32) -> (i32, i32) {
    %c0_i32 = arith.constant 0 : i32
    %c0_i32_0 = arith.constant 0 : i32
    %c0_i32_1 = arith.constant 0 : i32
    return %c0_i32, %c0_i32_0 : i32, i32
  }
  func.func @transform_4(%arg0: i32) -> (i32, i32) {
    %c0_i32 = arith.constant 0 : i32
    %c0_i32_0 = arith.constant 0 : i32
    return %arg0, %c0_i32 : i32, i32
  }
}

module attributes {stable_mosaic.version = 11 : i64} {
  func.func @gcn_layer_kernel(%arg0: i32, %arg1: memref<128x128xbf16, #tpu.memory_space<vmem>>, %arg2: memref<128x128xbf16, #tpu.memory_space<vmem>>, %arg3: memref<128x128xbf16, #tpu.memory_space<vmem>>, %arg4: memref<1x128xf32, #tpu.memory_space<vmem>>, %arg5: memref<128x128xf32, #tpu.memory_space<vmem>>) attributes {dimension_semantics = [#tpu.dimension_semantics<parallel>], iteration_bounds = array<i64: 1>, scalar_prefetch = 0 : i64, scratch_operands = 0 : i64, tpu.core_type = #tpu.core_type<tc>, window_params = [{transform_indices = @transform_0, window_bounds = array<i64: 128, 128>}, {pipeline_mode = #tpu.pipeline_mode<synchronous>, transform_indices = @transform_1, window_bounds = array<i64: 128, 128>}, {pipeline_mode = #tpu.pipeline_mode<synchronous>, transform_indices = @transform_2, window_bounds = array<i64: 128, 128>}, {pipeline_mode = #tpu.pipeline_mode<synchronous>, transform_indices = @transform_3, window_bounds = array<i64: 1, 128>}, {transform_indices = @transform_4, window_bounds = array<i64: 128, 128>}]} {
    %c0 = arith.constant 0 : index
    %c0_0 = arith.constant 0 : index
    %0 = vector.load %arg1[%c0, %c0_0] : memref<128x128xbf16, #tpu.memory_space<vmem>>, vector<128x128xbf16>
    %c0_1 = arith.constant 0 : index
    %c0_2 = arith.constant 0 : index
    %1 = vector.load %arg2[%c0_1, %c0_2] : memref<128x128xbf16, #tpu.memory_space<vmem>>, vector<128x128xbf16>
    %cst = arith.constant dense<0.000000e+00> : vector<128x128xf32>
    %2 = tpu.matmul %0, %1, %cst {dimension_numbers = #tpu.dot_dimension_numbers<[1], [0], [0], [1], [0, 0, 1, 1], [], []>} : vector<128x128xbf16>, vector<128x128xbf16>, vector<128x128xf32> -> vector<128x128xf32>
    %3 = arith.truncf %2 : vector<128x128xf32> to vector<128x128xbf16>
    %c0_3 = arith.constant 0 : index
    %c0_4 = arith.constant 0 : index
    %4 = vector.load %arg3[%c0_3, %c0_4] : memref<128x128xbf16, #tpu.memory_space<vmem>>, vector<128x128xbf16>
    %cst_5 = arith.constant dense<0.000000e+00> : vector<128x128xf32>
    %5 = tpu.matmul %3, %4, %cst_5 {dimension_numbers = #tpu.dot_dimension_numbers<[1], [0], [0], [1], [0, 0, 1, 1], [], []>} : vector<128x128xbf16>, vector<128x128xbf16>, vector<128x128xf32> -> vector<128x128xf32>
    %c0_6 = arith.constant 0 : index
    %c0_7 = arith.constant 0 : index
    %6 = vector.load %arg4[%c0_6, %c0_7] : memref<1x128xf32, #tpu.memory_space<vmem>>, vector<1x128xf32>
    %7 = vector.broadcast %6 : vector<1x128xf32> to vector<128x128xf32>
    %8 = arith.addf %5, %7 : vector<128x128xf32>
    %c0_8 = arith.constant 0 : index
    %c0_9 = arith.constant 0 : index
    %9 = vector.load %arg5[%c0_8, %c0_9] : memref<128x128xf32, #tpu.memory_space<vmem>>, vector<128x128xf32>
    tpu.vector_store %arg5[%c0_8, %c0_9], %8 {strides = array<i32>} : memref<128x128xf32, #tpu.memory_space<vmem>>, vector<128x128xf32>,
    return
  }
  func.func @transform_0(%arg0: i32) -> (i32, i32) {
    %c0_i32 = arith.constant 0 : i32
    %c0_i32_0 = arith.constant 0 : i32
    return %arg0, %c0_i32 : i32, i32
  }
  func.func @transform_1(%arg0: i32) -> (i32, i32) {
    %c0_i32 = arith.constant 0 : i32
    %c0_i32_0 = arith.constant 0 : i32
    %c0_i32_1 = arith.constant 0 : i32
    return %c0_i32, %c0_i32_0 : i32, i32
  }
  func.func @transform_2(%arg0: i32) -> (i32, i32) {
    %c0_i32 = arith.constant 0 : i32
    %c0_i32_0 = arith.constant 0 : i32
    %c0_i32_1 = arith.constant 0 : i32
    return %c0_i32, %c0_i32_0 : i32, i32
  }
  func.func @transform_3(%arg0: i32) -> (i32, i32) {
    %c0_i32 = arith.constant 0 : i32
    %c0_i32_0 = arith.constant 0 : i32
    %c0_i32_1 = arith.constant 0 : i32
    return %c0_i32, %c0_i32_0 : i32, i32
  }
  func.func @transform_4(%arg0: i32) -> (i32, i32) {
    %c0_i32 = arith.constant 0 : i32
    %c0_i32_0 = arith.constant 0 : i32
    return %arg0, %c0_i32 : i32, i32
  }
}

</mosaic_0001>

<bundles_post_ra>
// kernel: mul.1
= control target key start
LH: loop header
LB: loop body
LE: loop exit
PB: predicated region body
PF: predicated region fallthrough
CT: control target
= control target key end

     0   :  { %s34_s0 = inlined_call_operand.vmem [shape: f32[26], index: 0, kind: input, shape index: {}]   ;;  %s35_s1 = inlined_call_operand.vmem [shape: f32[26], index: 1, kind: input, shape index: {}]   ;;  %s36_s2 = inlined_call_operand.vmem [shape: f32[26], index: 2, kind: output, shape index: {}]  }
   0x1   :  { %v3_v0 = vld [vmem:[%s34_s0] sm:$0x1] }
   0x2   :  { %v4_v1 = vld [vmem:[%s35_s1] sm:$0x1] }
   0x3   :  { %v7_v2 = vmul.f32 %v4_v1, %v3_v0 }
   0x5   :  { %9 = vst [vmem:[%s36_s2] sm:$0x1] %v7_v2 }

// kernel: gcn_relation_predictor_forward.3
= control target key start
LH: loop header
LB: loop body
LE: loop exit
PB: predicated region body
PF: predicated region fallthrough
CT: control target
= control target key end

     0   :  { %s732_s1 = inlined_call_operand.vmem [shape: bf16[128,128], index: 1, kind: input, shape index: {}]   ;;  %s733_s0 = inlined_call_operand.vmem [shape: bf16[128,128], index: 0, kind: input, shape index: {}]   ;;  %s734_s2 = inlined_call_operand.vmem [shape: bf16[128,128], index: 2, kind: input, shape index: {}]   ;;  %s735_s3 = inlined_call_operand.vmem [shape: f32[1,128], index: 3, kind: input, shape index: {}]   ;;  %s736_s4 = inlined_call_operand.vmem [shape: f32[128,128], index: 4, kind: output, shape index: {}]  }
   0x1   :  { %v560_v0 = vld [vmem:[%s732_s1 + $0x38] sm:$0xff]   ;;  %v561_v1 = vld [vmem:[%s732_s1 + $0x30] sm:$0xff]   ;;  %v562_v2 = vld [vmem:[%s732_s1 + $0x28] sm:$0xff]  }
   0x2   :  { %496 = vmatprep.subr.bf16.mxu0 %v560_v0  ;;  %v563_v3 = vld [vmem:[%s732_s1 + $0x20] sm:$0xff]   ;;  %v564_v5 = vld [vmem:[%s732_s1 + $0x18] sm:$0xff]   ;;  %v565_v6 = vld [vmem:[%s732_s1 + $0x10] sm:$0xff]  }
   0x3   :  { %497 = vmatpush3.bf16.msra.mxu0 %v560_v0  ;;  %v568_v4 = vld [vmem:[%s733_s0] sm:$0xff]   ;;  %v576_v7 = vld [vmem:[%s734_s2 + $0x38] sm:$0xff]   ;;  %v577_v8 = vld [vmem:[%s734_s2 + $0x30] sm:$0xff]  }
   0x4   :  { %498 = vmatprep.subr.bf16.mxu0 %v561_v1  ;;  %512 = vmatprep.mubr.bf16.mxu0 %v568_v4  ;;  %v566_v9 = vld [vmem:[%s732_s1 + $0x8] sm:$0xff]   ;;  %v567_v11 = vld [vmem:[%s732_s1] sm:$0xff]   ;;  %v580_v13 = vld [vmem:[%s734_s2 + $0x18] sm:$0xff]  }
   0x5   :  { %528 = vmatprep.subr.bf16.mxu1 %v576_v7  ;;  %v578_v10 = vld [vmem:[%s734_s2 + $0x28] sm:$0xff]   ;;  %v579_v12 = vld [vmem:[%s734_s2 + $0x20] sm:$0xff]   ;;  %v570_v15 = vld [vmem:[%s733_s0 + $0x10] sm:$0xff]  }
   0x6   :  { %529 = vmatpush3.bf16.msra.mxu1 %v576_v7  ;;  %v569_v14 = vld [vmem:[%s733_s0 + $0x8] sm:$0xff]   ;;  %v581_v16 = vld [vmem:[%s734_s2 + $0x10] sm:$0xff]   ;;  %v571_v17 = vld [vmem:[%s733_s0 + $0x18] sm:$0xff]  }
   0x7   :  { %499 = vmatpush3.bf16.msra.mxu0 %v561_v1  ;;  %530 = vmatprep.subr.bf16.mxu1 %v577_v8  ;;  %v572_v18 = vld [vmem:[%s733_s0 + $0x20] sm:$0xff]   ;;  %v573_v19 = vld [vmem:[%s733_s0 + $0x28] sm:$0xff]   ;;  %v574_v20 = vld [vmem:[%s733_s0 + $0x30] sm:$0xff]  }
   0x8   :  { %500 = vmatprep.subr.bf16.mxu0 %v562_v2  ;;  %v575_v21 = vld [vmem:[%s733_s0 + $0x38] sm:$0xff]   ;;  %v582_v22 = vld [vmem:[%s734_s2 + $0x8] sm:$0xff]   ;;  %v583_v23 = vld [vmem:[%s734_s2] sm:$0xff]  }
   0x9   :  { %v455_v48 = vld [vmem:[%s735_s3] ss:$0 sm:$0xff] }
   0xa   :  { %531 = vmatpush3.bf16.msra.mxu1 %v577_v8 }
   0xb   :  { %501 = vmatpush3.bf16.msra.mxu0 %v562_v2  ;;  %532 = vmatprep.subr.bf16.mxu1 %v578_v10 }
   0xc   :  { %502 = vmatprep.subr.bf16.mxu0 %v563_v3 }
   0xe   :  { %533 = vmatpush3.bf16.msra.mxu1 %v578_v10 }
   0xf   :  { %503 = vmatpush3.bf16.msra.mxu0 %v563_v3  ;;  %534 = vmatprep.subr.bf16.mxu1 %v579_v12 }
  0x10   :  { %504 = vmatprep.subr.bf16.mxu0 %v564_v5 }
  0x12   :  { %535 = vmatpush3.bf16.msra.mxu1 %v579_v12 }
  0x13   :  { %505 = vmatpush3.bf16.msra.mxu0 %v564_v5  ;;  %536 = vmatprep.subr.bf16.mxu1 %v580_v13 }
  0x14   :  { %506 = vmatprep.subr.bf16.mxu0 %v565_v6 }
  0x16   :  { %537 = vmatpush3.bf16.msra.mxu1 %v580_v13 }
  0x17   :  { %507 = vmatpush3.bf16.msra.mxu0 %v565_v6  ;;  %538 = vmatprep.subr.bf16.mxu1 %v581_v16 }
  0x18   :  { %508 = vmatprep.subr.bf16.mxu0 %v566_v9 }
  0x1a   :  { %539 = vmatpush3.bf16.msra.mxu1 %v581_v16 }
  0x1b   :  { %509 = vmatpush3.bf16.msra.mxu0 %v566_v9  ;;  %540 = vmatprep.subr.bf16.mxu1 %v582_v22 }
  0x1c   :  { %510 = vmatprep.subr.bf16.mxu0 %v567_v11 }
  0x1e   :  { %541 = vmatpush3.bf16.msra.mxu1 %v582_v22 }
  0x1f   :  { %511 = vmatpush3.bf16.msra.mxu0 %v567_v11  ;;  %542 = vmatprep.subr.bf16.mxu1 %v583_v23 }
  0x22   :  { %513 = vmatmul.mubr.bf16.vlgmr.msra.gmra.mxu0 %v569_v14  ;;  %543 = vmatpush3.bf16.msra.mxu1 %v583_v23 }
  0x23   :  { %516 = vmatprep.mubr.bf16.mxu0 %v570_v15 }
  0x2a   :  { %517 = vmatmul.mubr.bf16.gmra.mxu0 %v571_v17 }
  0x2b   :  { %520 = vmatprep.mubr.bf16.mxu0 %v572_v18 }
  0x32   :  { %521 = vmatmul.mubr.bf16.gmra.mxu0 %v573_v19 }
  0x33   :  { %524 = vmatprep.mubr.bf16.mxu0 %v574_v20 }
  0x3a   :  { %525 = vmatmul.mubr.bf16.gmra.mxu0 %v575_v21 }
  0xe2   :  { %v514_v24 = vpop.f32.mrf.mxu0 }
  0xe4   :  { %v180_v25 = vpop.f32.mrf.mxu0 }
  0xe6   :  { %v515_v26 = vpop.f32.mrf.mxu0 }
  0xe7   :  { %v244_v29 = vpack.c.bf16 %v515_v26, %v514_v24 }
  0xe8   :  { %v183_v27 = vpop.f32.mrf.mxu0 }
  0xe9   :  { %v243_v28 = vpack.c.bf16 %v183_v27, %v180_v25 }
  0xea   :  { %v518_v30 = vpop.f32.mrf.mxu0 }
  0xeb   :  { %544 = vmatprep.mubr.bf16.mxu1 %v243_v28 }
  0xec   :  { %v196_v31 = vpop.f32.mrf.mxu0  ;;  %545 = vmatmul.mubr.bf16.vlgmr.msra.gmra.mxu1 %v244_v29 }
  0xee   :  { %v519_v32 = vpop.f32.mrf.mxu0 }
  0xef   :  { %v246_v35 = vpack.c.bf16 %v519_v32, %v518_v30 }
  0xf0   :  { %v199_v33 = vpop.f32.mrf.mxu0 }
  0xf1   :  { %v245_v34 = vpack.c.bf16 %v199_v33, %v196_v31 }
  0xf2   :  { %v522_v36 = vpop.f32.mrf.mxu0 }
  0xf3   :  { %548 = vmatprep.mubr.bf16.mxu1 %v245_v34 }
  0xf4   :  { %v212_v37 = vpop.f32.mrf.mxu0  ;;  %549 = vmatmul.mubr.bf16.gmra.mxu1 %v246_v35 }
  0xf6   :  { %v523_v38 = vpop.f32.mrf.mxu0 }
  0xf7   :  { %v248_v41 = vpack.c.bf16 %v523_v38, %v522_v36 }
  0xf8   :  { %v215_v39 = vpop.f32.mrf.mxu0 }
  0xf9   :  { %v247_v40 = vpack.c.bf16 %v215_v39, %v212_v37 }
  0xfa   :  { %v526_v42 = vpop.f32.mrf.mxu0 }
  0xfb   :  { %552 = vmatprep.mubr.bf16.mxu1 %v247_v40 }
  0xfc   :  { %v228_v43 = vpop.f32.mrf.mxu0  ;;  %553 = vmatmul.mubr.bf16.gmra.mxu1 %v248_v41 }
  0xfe   :  { %v527_v44 = vpop.f32.mrf.mxu0 }
  0xff   :  { %v250_v47 = vpack.c.bf16 %v527_v44, %v526_v42 }
 0x100   :  { %v231_v45 = vpop.f32.mrf.mxu0 }
 0x101   :  { %v249_v46 = vpack.c.bf16 %v231_v45, %v228_v43 }
 0x103   :  { %556 = vmatprep.mubr.bf16.mxu1 %v249_v46 }
 0x104   :  { %557 = vmatmul.mubr.bf16.gmra.mxu1 %v250_v47 }
 0x1ac   :  { %v546_v49 = vpop.f32.mrf.mxu1 }
 0x1ad   :  { %v365_v50 = vadd.f32 %v546_v49, %v455_v48 }
 0x1ae   :  { %v356_v51 = vpop.f32.mrf.mxu1 }
 0x1af   :  { %421 = vst [vmem:[%s736_s4 + $0x10] sm:$0xff] %v365_v50  ;;  %v357_v52 = vadd.f32 %v455_v48, %v356_v51 }
 0x1b0   :  { %v547_v53 = vpop.f32.mrf.mxu1 }
 0x1b1   :  { %419 = vst [vmem:[%s736_s4] sm:$0xff] %v357_v52  ;;  %v368_v54 = vadd.f32 %v547_v53, %v455_v48 }
 0x1b2   :  { %v359_v55 = vpop.f32.mrf.mxu1 }
 0x1b3   :  { %422 = vst [vmem:[%s736_s4 + $0x18] sm:$0xff] %v368_v54  ;;  %v360_v56 = vadd.f32 %v455_v48, %v359_v55 }
 0x1b4   :  { %v550_v57 = vpop.f32.mrf.mxu1 }
 0x1b5   :  { %420 = vst [vmem:[%s736_s4 + $0x8] sm:$0xff] %v360_v56  ;;  %v381_v58 = vadd.f32 %v550_v57, %v455_v48 }
 0x1b6   :  { %v372_v59 = vpop.f32.mrf.mxu1 }
 0x1b7   :  { %425 = vst [vmem:[%s736_s4 + $0x30] sm:$0xff] %v381_v58  ;;  %v373_v60 = vadd.f32 %v455_v48, %v372_v59 }
 0x1b8   :  { %v551_v61 = vpop.f32.mrf.mxu1 }
 0x1b9   :  { %423 = vst [vmem:[%s736_s4 + $0x20] sm:$0xff] %v373_v60  ;;  %v384_v62 = vadd.f32 %v551_v61, %v455_v48 }
 0x1ba   :  { %v375_v63 = vpop.f32.mrf.mxu1 }
 0x1bb   :  { %426 = vst [vmem:[%s736_s4 + $0x38] sm:$0xff] %v384_v62  ;;  %v376_v0 = vadd.f32 %v455_v48, %v375_v63 }
 0x1bc   :  { %v554_v1 = vpop.f32.mrf.mxu1 }
 0x1bd   :  { %424 = vst [vmem:[%s736_s4 + $0x28] sm:$0xff] %v376_v0  ;;  %v397_v2 = vadd.f32 %v554_v1, %v455_v48 }
 0x1be   :  { %v388_v3 = vpop.f32.mrf.mxu1 }
 0x1bf   :  { %429 = vst [vmem:[%s736_s4 + $0x50] sm:$0xff] %v397_v2  ;;  %v389_v4 = vadd.f32 %v455_v48, %v388_v3 }
 0x1c0   :  { %v555_v5 = vpop.f32.mrf.mxu1 }
 0x1c1   :  { %427 = vst [vmem:[%s736_s4 + $0x40] sm:$0xff] %v389_v4  ;;  %v400_v6 = vadd.f32 %v555_v5, %v455_v48 }
 0x1c2   :  { %v391_v7 = vpop.f32.mrf.mxu1 }
 0x1c3   :  { %430 = vst [vmem:[%s736_s4 + $0x58] sm:$0xff] %v400_v6  ;;  %v392_v8 = vadd.f32 %v455_v48, %v391_v7 }
 0x1c4   :  { %v558_v9 = vpop.f32.mrf.mxu1 }
 0x1c5   :  { %428 = vst [vmem:[%s736_s4 + $0x48] sm:$0xff] %v392_v8  ;;  %v413_v10 = vadd.f32 %v558_v9, %v455_v48 }
 0x1c6   :  { %v404_v11 = vpop.f32.mrf.mxu1 }
 0x1c7   :  { %433 = vst [vmem:[%s736_s4 + $0x70] sm:$0xff] %v413_v10  ;;  %v405_v12 = vadd.f32 %v455_v48, %v404_v11 }
 0x1c8   :  { %v559_v13 = vpop.f32.mrf.mxu1 }
 0x1c9   :  { %431 = vst [vmem:[%s736_s4 + $0x60] sm:$0xff] %v405_v12  ;;  %v416_v14 = vadd.f32 %v559_v13, %v455_v48 }
 0x1ca   :  { %v407_v15 = vpop.f32.mrf.mxu1 }
 0x1cb   :  { %434 = vst [vmem:[%s736_s4 + $0x78] sm:$0xff] %v416_v14  ;;  %v408_v16 = vadd.f32 %v455_v48, %v407_v15 }
 0x1cd   :  { %432 = vst [vmem:[%s736_s4 + $0x68] sm:$0xff] %v408_v16 }

// kernel: gcn_relation_predictor_forward.2
= control target key start
LH: loop header
LB: loop body
LE: loop exit
PB: predicated region body
PF: predicated region fallthrough
CT: control target
= control target key end

     0   :  { %s867_s1 = inlined_call_operand.vmem [shape: bf16[128,128], index: 1, kind: input, shape index: {}]   ;;  %s868_s0 = inlined_call_operand.vmem [shape: bf16[128,128], index: 0, kind: input, shape index: {}]   ;;  %s869_s2 = inlined_call_operand.vmem [shape: bf16[128,128], index: 2, kind: input, shape index: {}]   ;;  %s870_s3 = inlined_call_operand.vmem [shape: f32[1,128], index: 3, kind: input, shape index: {}]   ;;  %s871_s4 = inlined_call_operand.vmem [shape: bf16[128,128], index: 4, kind: output, shape index: {}]  }
   0x1   :  { %v719_v0 = vld [vmem:[%s867_s1 + $0x38] sm:$0xff]   ;;  %v720_v1 = vld [vmem:[%s867_s1 + $0x30] sm:$0xff]   ;;  %v721_v2 = vld [vmem:[%s867_s1 + $0x28] sm:$0xff]  }
   0x2   :  { %655 = vmatprep.subr.bf16.mxu0 %v719_v0  ;;  %v722_v3 = vld [vmem:[%s867_s1 + $0x20] sm:$0xff]   ;;  %v723_v5 = vld [vmem:[%s867_s1 + $0x18] sm:$0xff]   ;;  %v724_v6 = vld [vmem:[%s867_s1 + $0x10] sm:$0xff]  }
   0x3   :  { %656 = vmatpush3.bf16.msra.mxu0 %v719_v0  ;;  %v727_v4 = vld [vmem:[%s868_s0] sm:$0xff]   ;;  %v735_v7 = vld [vmem:[%s869_s2 + $0x38] sm:$0xff]   ;;  %v736_v8 = vld [vmem:[%s869_s2 + $0x30] sm:$0xff]  }
   0x4   :  { %657 = vmatprep.subr.bf16.mxu0 %v720_v1  ;;  %671 = vmatprep.mubr.bf16.mxu0 %v727_v4  ;;  %v725_v9 = vld [vmem:[%s867_s1 + $0x8] sm:$0xff]   ;;  %v726_v11 = vld [vmem:[%s867_s1] sm:$0xff]   ;;  %v739_v13 = vld [vmem:[%s869_s2 + $0x18] sm:$0xff]  }
   0x5   :  { %687 = vmatprep.subr.bf16.mxu1 %v735_v7  ;;  %v737_v10 = vld [vmem:[%s869_s2 + $0x28] sm:$0xff]   ;;  %v738_v12 = vld [vmem:[%s869_s2 + $0x20] sm:$0xff]   ;;  %v729_v15 = vld [vmem:[%s868_s0 + $0x10] sm:$0xff]  }
   0x6   :  { %688 = vmatpush3.bf16.msra.mxu1 %v735_v7  ;;  %v728_v14 = vld [vmem:[%s868_s0 + $0x8] sm:$0xff]   ;;  %v740_v16 = vld [vmem:[%s869_s2 + $0x10] sm:$0xff]   ;;  %v730_v17 = vld [vmem:[%s868_s0 + $0x18] sm:$0xff]  }
   0x7   :  { %658 = vmatpush3.bf16.msra.mxu0 %v720_v1  ;;  %689 = vmatprep.subr.bf16.mxu1 %v736_v8  ;;  %v731_v18 = vld [vmem:[%s868_s0 + $0x20] sm:$0xff]   ;;  %v732_v19 = vld [vmem:[%s868_s0 + $0x28] sm:$0xff]   ;;  %v733_v20 = vld [vmem:[%s868_s0 + $0x30] sm:$0xff]  }
   0x8   :  { %659 = vmatprep.subr.bf16.mxu0 %v721_v2  ;;  %v734_v21 = vld [vmem:[%s868_s0 + $0x38] sm:$0xff]   ;;  %v741_v22 = vld [vmem:[%s869_s2 + $0x8] sm:$0xff]   ;;  %v742_v23 = vld [vmem:[%s869_s2] sm:$0xff]  }
   0x9   :  { %v535_v49 = vld [vmem:[%s870_s3] ss:$0 sm:$0xff] }
   0xa   :  { %690 = vmatpush3.bf16.msra.mxu1 %v736_v8 }
   0xb   :  { %660 = vmatpush3.bf16.msra.mxu0 %v721_v2  ;;  %691 = vmatprep.subr.bf16.mxu1 %v737_v10 }
   0xc   :  { %661 = vmatprep.subr.bf16.mxu0 %v722_v3 }
   0xe   :  { %692 = vmatpush3.bf16.msra.mxu1 %v737_v10 }
   0xf   :  { %662 = vmatpush3.bf16.msra.mxu0 %v722_v3  ;;  %693 = vmatprep.subr.bf16.mxu1 %v738_v12 }
  0x10   :  { %663 = vmatprep.subr.bf16.mxu0 %v723_v5 }
  0x12   :  { %694 = vmatpush3.bf16.msra.mxu1 %v738_v12 }
  0x13   :  { %664 = vmatpush3.bf16.msra.mxu0 %v723_v5  ;;  %695 = vmatprep.subr.bf16.mxu1 %v739_v13 }
  0x14   :  { %665 = vmatprep.subr.bf16.mxu0 %v724_v6 }
  0x16   :  { %696 = vmatpush3.bf16.msra.mxu1 %v739_v13 }
  0x17   :  { %666 = vmatpush3.bf16.msra.mxu0 %v724_v6  ;;  %697 = vmatprep.subr.bf16.mxu1 %v740_v16 }
  0x18   :  { %667 = vmatprep.subr.bf16.mxu0 %v725_v9 }
  0x1a   :  { %698 = vmatpush3.bf16.msra.mxu1 %v740_v16 }
  0x1b   :  { %668 = vmatpush3.bf16.msra.mxu0 %v725_v9  ;;  %699 = vmatprep.subr.bf16.mxu1 %v741_v22 }
  0x1c   :  { %669 = vmatprep.subr.bf16.mxu0 %v726_v11 }
  0x1e   :  { %700 = vmatpush3.bf16.msra.mxu1 %v741_v22 }
  0x1f   :  { %670 = vmatpush3.bf16.msra.mxu0 %v726_v11  ;;  %701 = vmatprep.subr.bf16.mxu1 %v742_v23 }
  0x22   :  { %672 = vmatmul.mubr.bf16.vlgmr.msra.gmra.mxu0 %v728_v14  ;;  %702 = vmatpush3.bf16.msra.mxu1 %v742_v23 }
  0x23   :  { %675 = vmatprep.mubr.bf16.mxu0 %v729_v15 }
  0x2a   :  { %676 = vmatmul.mubr.bf16.gmra.mxu0 %v730_v17 }
  0x2b   :  { %679 = vmatprep.mubr.bf16.mxu0 %v731_v18 }
  0x32   :  { %680 = vmatmul.mubr.bf16.gmra.mxu0 %v732_v19 }
  0x33   :  { %683 = vmatprep.mubr.bf16.mxu0 %v733_v20 }
  0x3a   :  { %684 = vmatmul.mubr.bf16.gmra.mxu0 %v734_v21 }
  0xe2   :  { %v673_v24 = vpop.f32.mrf.mxu0 }
  0xe4   :  { %v180_v25 = vpop.f32.mrf.mxu0 }
  0xe6   :  { %v674_v26 = vpop.f32.mrf.mxu0 }
  0xe7   :  { %v244_v29 = vpack.c.bf16 %v674_v26, %v673_v24 }
  0xe8   :  { %v183_v27 = vpop.f32.mrf.mxu0 }
  0xe9   :  { %v243_v28 = vpack.c.bf16 %v183_v27, %v180_v25 }
  0xea   :  { %v677_v30 = vpop.f32.mrf.mxu0 }
  0xeb   :  { %703 = vmatprep.mubr.bf16.mxu1 %v243_v28 }
  0xec   :  { %v196_v31 = vpop.f32.mrf.mxu0  ;;  %704 = vmatmul.mubr.bf16.vlgmr.msra.gmra.mxu1 %v244_v29 }
  0xee   :  { %v678_v32 = vpop.f32.mrf.mxu0 }
  0xef   :  { %v246_v35 = vpack.c.bf16 %v678_v32, %v677_v30 }
  0xf0   :  { %v199_v33 = vpop.f32.mrf.mxu0 }
  0xf1   :  { %v245_v34 = vpack.c.bf16 %v199_v33, %v196_v31 }
  0xf2   :  { %v681_v36 = vpop.f32.mrf.mxu0 }
  0xf3   :  { %707 = vmatprep.mubr.bf16.mxu1 %v245_v34 }
  0xf4   :  { %v212_v37 = vpop.f32.mrf.mxu0  ;;  %708 = vmatmul.mubr.bf16.gmra.mxu1 %v246_v35 }
  0xf6   :  { %v682_v38 = vpop.f32.mrf.mxu0 }
  0xf7   :  { %v248_v41 = vpack.c.bf16 %v682_v38, %v681_v36 }
  0xf8   :  { %v215_v39 = vpop.f32.mrf.mxu0 }
  0xf9   :  { %v247_v40 = vpack.c.bf16 %v215_v39, %v212_v37 }
  0xfa   :  { %v685_v42 = vpop.f32.mrf.mxu0 }
  0xfb   :  { %711 = vmatprep.mubr.bf16.mxu1 %v247_v40 }
  0xfc   :  { %v228_v43 = vpop.f32.mrf.mxu0  ;;  %712 = vmatmul.mubr.bf16.gmra.mxu1 %v248_v41 }
  0xfe   :  { %v686_v44 = vpop.f32.mrf.mxu0 }
  0xff   :  { %v250_v47 = vpack.c.bf16 %v686_v44, %v685_v42 }
 0x100   :  { %v231_v45 = vpop.f32.mrf.mxu0 }
 0x101   :  { %v249_v46 = vpack.c.bf16 %v231_v45, %v228_v43 }
 0x103   :  { %715 = vmatprep.mubr.bf16.mxu1 %v249_v46 }
 0x104   :  { %716 = vmatmul.mubr.bf16.gmra.mxu1 %v250_v47 }
 0x1ac   :  { %v705_v48 = vpop.f32.mrf.mxu1 }
 0x1ad   :  { %v365_v51 = vadd.f32 %v705_v48, %v535_v49 }
 0x1ae   :  { %v356_v50 = vpop.f32.mrf.mxu1 }
 0x1af   :  { %v357_v53 = vadd.f32 %v535_v49, %v356_v50  ;;  %v421_v56 = vmax.f32 %v365_v51, 0.0 }
 0x1b0   :  { %v706_v52 = vpop.f32.mrf.mxu1 }
 0x1b1   :  { %v368_v54 = vadd.f32 %v706_v52, %v535_v49  ;;  %v419_v60 = vmax.f32 %v357_v53, 0.0 }
 0x1b2   :  { %v359_v55 = vpop.f32.mrf.mxu1 }
 0x1b3   :  { %v422_v57 = vmax.f32 %v368_v54, 0.0  ;;  %v360_v58 = vadd.f32 %v535_v49, %v359_v55 }
 0x1b4   :  { %v709_v59 = vpop.f32.mrf.mxu1 }
 0x1b5   :  { %v584_v61 = vpack.c.bf16 %v422_v57, %v421_v56  ;;  %v420_v62 = vmax.f32 %v360_v58, 0.0  ;;  %v381_v1 = vadd.f32 %v709_v59, %v535_v49 }
 0x1b6   :  { %v372_v63 = vpop.f32.mrf.mxu1 }
 0x1b7   :  { %616 = vst [vmem:[%s871_s4 + $0x8] sm:$0xff] %v584_v61   ;;  %v579_v0 = vpack.c.bf16 %v420_v62, %v419_v60  ;;  %v373_v3 = vadd.f32 %v535_v49, %v372_v63  ;;  %v425_v6 = vmax.f32 %v381_v1, 0.0 }
 0x1b8   :  { %v710_v2 = vpop.f32.mrf.mxu1 }
 0x1b9   :  { %580 = vst [vmem:[%s871_s4] sm:$0xff] %v579_v0   ;;  %v384_v4 = vadd.f32 %v710_v2, %v535_v49  ;;  %v423_v10 = vmax.f32 %v373_v3, 0.0 }
 0x1ba   :  { %v375_v5 = vpop.f32.mrf.mxu1 }
 0x1bb   :  { %v426_v7 = vmax.f32 %v384_v4, 0.0  ;;  %v376_v8 = vadd.f32 %v535_v49, %v375_v5 }
 0x1bc   :  { %v713_v9 = vpop.f32.mrf.mxu1 }
 0x1bd   :  { %v594_v11 = vpack.c.bf16 %v426_v7, %v425_v6  ;;  %v424_v12 = vmax.f32 %v376_v8, 0.0  ;;  %v397_v15 = vadd.f32 %v713_v9, %v535_v49 }
 0x1be   :  { %v388_v13 = vpop.f32.mrf.mxu1 }
 0x1bf   :  { %618 = vst [vmem:[%s871_s4 + $0x18] sm:$0xff] %v594_v11   ;;  %v589_v14 = vpack.c.bf16 %v424_v12, %v423_v10  ;;  %v389_v17 = vadd.f32 %v535_v49, %v388_v13  ;;  %v429_v20 = vmax.f32 %v397_v15, 0.0 }
 0x1c0   :  { %v714_v16 = vpop.f32.mrf.mxu1 }
 0x1c1   :  { %617 = vst [vmem:[%s871_s4 + $0x10] sm:$0xff] %v589_v14   ;;  %v400_v18 = vadd.f32 %v714_v16, %v535_v49  ;;  %v427_v24 = vmax.f32 %v389_v17, 0.0 }
 0x1c2   :  { %v391_v19 = vpop.f32.mrf.mxu1 }
 0x1c3   :  { %v430_v21 = vmax.f32 %v400_v18, 0.0  ;;  %v392_v22 = vadd.f32 %v535_v49, %v391_v19 }
 0x1c4   :  { %v717_v23 = vpop.f32.mrf.mxu1 }
 0x1c5   :  { %v604_v25 = vpack.c.bf16 %v430_v21, %v429_v20  ;;  %v428_v26 = vmax.f32 %v392_v22, 0.0  ;;  %v413_v29 = vadd.f32 %v717_v23, %v535_v49 }
 0x1c6   :  { %v404_v27 = vpop.f32.mrf.mxu1 }
 0x1c7   :  { %620 = vst [vmem:[%s871_s4 + $0x28] sm:$0xff] %v604_v25   ;;  %v599_v28 = vpack.c.bf16 %v428_v26, %v427_v24  ;;  %v405_v31 = vadd.f32 %v535_v49, %v404_v27  ;;  %v433_v34 = vmax.f32 %v413_v29, 0.0 }
 0x1c8   :  { %v718_v30 = vpop.f32.mrf.mxu1 }
 0x1c9   :  { %619 = vst [vmem:[%s871_s4 + $0x20] sm:$0xff] %v599_v28   ;;  %v416_v32 = vadd.f32 %v718_v30, %v535_v49  ;;  %v431_v37 = vmax.f32 %v405_v31, 0.0 }
 0x1ca   :  { %v407_v33 = vpop.f32.mrf.mxu1 }
 0x1cb   :  { %v434_v35 = vmax.f32 %v416_v32, 0.0  ;;  %v408_v36 = vadd.f32 %v535_v49, %v407_v33 }
 0x1cd   :  { %v614_v38 = vpack.c.bf16 %v434_v35, %v433_v34  ;;  %v432_v39 = vmax.f32 %v408_v36, 0.0 }
 0x1cf   :  { %622 = vst [vmem:[%s871_s4 + $0x38] sm:$0xff] %v614_v38   ;;  %v609_v40 = vpack.c.bf16 %v432_v39, %v431_v37 }
 0x1d1   :  { %621 = vst [vmem:[%s871_s4 + $0x30] sm:$0xff] %v609_v40  }

</bundles_post_ra>
